<compile_context>
chip_gen: v6e
topology: v6e:2x2x1
jax: 0.10.0
libtpu: 0.0.40
codegen_flags: <defaults>
</compile_context>

<pallas_src>
from functools import partial

import numpy as np
import jax
import jax.numpy as jnp
from jax.experimental import pallas as pl
from jax.experimental.pallas import tpu as pltpu


MXU_DTYPE = jnp.bfloat16   # MXU operand dtype; accumulation stays f32
TBLK = 8                   # adder-scan timesteps per grid step
SUB = 8                    # sublane multiple for row padding


def _round_up(n, m):
    return ((n + m - 1) // m) * m


# ---------------------------------------------------------------------------
# Pallas kernels
# ---------------------------------------------------------------------------
def _linear_kernel(x_ref, wt_ref, b_ref, o_ref):
    # y = x @ W^T + b   (W pre-transposed (Din, Dout), stored bf16; acc f32)
    w = wt_ref[...]
    o_ref[...] = (
        jnp.dot(x_ref[...].astype(w.dtype), w,
                preferred_element_type=jnp.float32)
        + b_ref[...]
    )


def linear_pallas(x, wt, b2, *, block_rows=512):
    """x: (N, Din) f32, wt: (Din, Dout) bf16/f32, b2: (1, Dout) f32 -> (N, Dout) f32."""
    N, Din = x.shape
    Dout = wt.shape[1]
    rows = N if N <= block_rows else block_rows
    grid = (pl.cdiv(N, rows),)                 # no jnp.pad copy; tail handled by Pallas
    return pl.pallas_call(
        _linear_kernel,
        out_shape=jax.ShapeDtypeStruct((N, Dout), jnp.float32),
        grid=grid,
        in_specs=[pl.BlockSpec((rows, Din), lambda i: (i, 0)),
                  pl.BlockSpec((Din, Dout), lambda i: (0, 0)),   # W VMEM-resident
                  pl.BlockSpec((1, Dout), lambda i: (0, 0))],
        out_specs=pl.BlockSpec((rows, Dout), lambda i: (i, 0)),
        compiler_params=pltpu.CompilerParams(
            dimension_semantics=("parallel",)),
    )(x.astype(jnp.float32), wt, b2)


def _adder_scan_kernel(len_ref, gi_ref, wht_ref, bh_ref, h0_ref,
                       out_ref, hT_ref, h_scr):
    # Time-blocked GRU recurrence.  gi (input projection) is precomputed; only
    # the serial gh = h @ Wh^T runs per step.  h lives in VMEM scratch across
    # grid steps; TBLK steps per grid step amortize pipeline overhead.
    blk = pl.program_id(0)
    tblk = gi_ref.shape[0]
    NBp, H = h_scr.shape

    @pl.when(blk == 0)
    def _init():
        h_scr[...] = jnp.broadcast_to(h0_ref[...], (NBp, H))

    wht = wht_ref[...]                                       # (H, 3H) bf16
    bh = bh_ref[...]                                         # (1, 3H) f32
    lens = len_ref[...]                                      # (NBp, 1) int32

    def step(tt, h):
        gi = gi_ref[tt]                                      # (NBp, 3H) f32
        gh = jnp.dot(h.astype(wht.dtype), wht,
                     preferred_element_type=jnp.float32) + bh
        r = jax.nn.sigmoid(gi[:, 0:H] + gh[:, 0:H])
        z = jax.nn.sigmoid(gi[:, H:2 * H] + gh[:, H:2 * H])
        n = jnp.tanh(gi[:, 2 * H:3 * H] + r * gh[:, 2 * H:3 * H])
        h_new = (1.0 - z) * n + z * h
        t = blk * tblk + tt
        h_upd = jnp.where(lens > t, h_new, h)                # length mask
        out_ref[tt] = h_upd
        return h_upd

    h_fin = jax.lax.fori_loop(0, tblk, step, h_scr[...], unroll=True)
    h_scr[...] = h_fin

    @pl.when(blk == pl.num_programs(0) - 1)
    def _store_final():                                      # hT stored once
        hT_ref[...] = h_fin


def adder_scan_pallas(gi, lengths, wh_t, bh, h0):
    """gi: (Lp, NBp, 3H) f32, lengths: (NBp,1) i32 -> (out (Lp,NBp,H), hT (NBp,H))."""
    Lp, NBp, G = gi.shape
    H = G // 3
    return pl.pallas_call(
        _adder_scan_kernel,
        out_shape=(jax.ShapeDtypeStruct((Lp, NBp, H), jnp.float32),
                   jax.ShapeDtypeStruct((NBp, H), jnp.float32)),
        grid=(Lp // TBLK,),
        in_specs=[pl.BlockSpec((NBp, 1), lambda t: (0, 0)),
                  pl.BlockSpec((TBLK, NBp, G), lambda t: (t, 0, 0)),
                  pl.BlockSpec((H, G), lambda t: (0, 0)),
                  pl.BlockSpec((1, G), lambda t: (0, 0)),
                  pl.BlockSpec((1, H), lambda t: (0, 0))],
        out_specs=(pl.BlockSpec((TBLK, NBp, H), lambda t: (t, 0, 0)),
                   pl.BlockSpec((NBp, H), lambda t: (0, 0))),
        scratch_shapes=[pltpu.VMEM((NBp, H), jnp.float32)],
        compiler_params=pltpu.CompilerParams(
            dimension_semantics=("arbitrary",)),
    )(lengths, gi, wh_t, bh, h0)


def _gru_cell_kernel(x_ref, h_ref, wit_ref, wht_ref, bi_ref, bh_ref, o_ref):
    # Single GRU step for a tile of rows (miner GRU: one step per chosen frame).
    H = o_ref.shape[1]
    wi = wit_ref[...]
    wh = wht_ref[...]
    gi = jnp.dot(x_ref[...].astype(wi.dtype), wi,
                 preferred_element_type=jnp.float32) + bi_ref[...]
    gh = jnp.dot(h_ref[...].astype(wh.dtype), wh,
                 preferred_element_type=jnp.float32) + bh_ref[...]
    r = jax.nn.sigmoid(gi[:, 0:H] + gh[:, 0:H])
    z = jax.nn.sigmoid(gi[:, H:2 * H] + gh[:, H:2 * H])
    n = jnp.tanh(gi[:, 2 * H:3 * H] + r * gh[:, 2 * H:3 * H])
    o_ref[...] = (1.0 - z) * n + z * h_ref[...]


def gru_cell_pallas(x, h, wi_t, wh_t, bi, bh, *, block_rows=256):
    N, D = x.shape
    H = h.shape[1]
    G = 3 * H
    rows = N if N <= block_rows else block_rows
    grid = (pl.cdiv(N, rows),)                       # real grid -> both v7x TCs
    return pl.pallas_call(
        _gru_cell_kernel,
        out_shape=jax.ShapeDtypeStruct((N, H), jnp.float32),
        grid=grid,
        in_specs=[pl.BlockSpec((rows, D), lambda i: (i, 0)),
                  pl.BlockSpec((rows, H), lambda i: (i, 0)),
                  pl.BlockSpec((D, G), lambda i: (0, 0)),
                  pl.BlockSpec((H, G), lambda i: (0, 0)),
                  pl.BlockSpec((1, G), lambda i: (0, 0)),
                  pl.BlockSpec((1, G), lambda i: (0, 0))],
        out_specs=pl.BlockSpec((rows, H), lambda i: (i, 0)),
        compiler_params=pltpu.CompilerParams(
            dimension_semantics=("parallel",)),
    )(x.astype(jnp.float32), h.astype(jnp.float32), wi_t, wh_t, bi, bh)


def _log_sigmoid_clamped(x):
    # log(sigmoid(x)) = -softplus(-x), numerically stable; -100 clamp matches
    # torch.nn.BCELoss's clamp on log(p).
    ls = jnp.minimum(x, 0.0) - jnp.log(1.0 + jnp.exp(-jnp.abs(x)))
    return jnp.maximum(ls, -100.0)


def _wbce_vad_kernel(emb_ref, v_ref, y_ref, w_ref, o_ref):
    # p = sigmoid(<emb_row, v>); per-batch sum of -w*(y log p + (1-y) log(1-p))
    e = emb_ref[...]                                          # (B, T, D)
    logits = jnp.sum(e * v_ref[...], axis=-1)                 # (B, T)
    y = y_ref[...]
    w = w_ref[...]
    loss = -w * (y * _log_sigmoid_clamped(logits)
                 + (1.0 - y) * _log_sigmoid_clamped(-logits))
    o_ref[...] = jnp.sum(loss, axis=1, keepdims=True)         # (B, 1)


def wbce_vad_batched(emb, v, y, w):
    """emb (B,T,D), v (1,D), y/w (B,T) -> per-batch weighted-BCE sums (B,)."""
    B, T, D = emb.shape
    out = pl.pallas_call(
        _wbce_vad_kernel,
        out_shape=jax.ShapeDtypeStruct((B, 1), jnp.float32),
        grid=(1,),                                            # whole batch, one step
        in_specs=[pl.BlockSpec((B, T, D), lambda i: (0, 0, 0)),
                  pl.BlockSpec((1, D), lambda i: (0, 0)),
                  pl.BlockSpec((B, T), lambda i: (0, 0)),
                  pl.BlockSpec((B, T), lambda i: (0, 0))],
        out_specs=pl.BlockSpec((B, 1), lambda i: (0, 0)),
    )(emb.astype(jnp.float32), v.astype(jnp.float32), y, w)
    return out[:, 0]


def _wbce_pair_kernel(a_ref, b_ref, y_ref, w_ref, o_ref):
    a = a_ref[...]                                            # (B, T, D)
    bb = b_ref[...]                                           # (B, T, D)
    logits = jnp.sum(a * bb, axis=-1)                         # (B, T)
    y = y_ref[...]
    w = w_ref[...]
    loss = -w * (y * _log_sigmoid_clamped(logits)
                 + (1.0 - y) * _log_sigmoid_clamped(-logits))
    o_ref[...] = jnp.sum(loss, axis=1, keepdims=True)


def wbce_pair_batched(a, b, y, w):
    """row-dot(a,b) -> sigmoid -> weighted BCE; per-batch sums (B,)."""
    B, T, D = a.shape
    out = pl.pallas_call(
        _wbce_pair_kernel,
        out_shape=jax.ShapeDtypeStruct((B, 1), jnp.float32),
        grid=(1,),
        in_specs=[pl.BlockSpec((B, T, D), lambda i: (0, 0, 0)),
                  pl.BlockSpec((B, T, D), lambda i: (0, 0, 0)),
                  pl.BlockSpec((B, T), lambda i: (0, 0)),
                  pl.BlockSpec((B, T), lambda i: (0, 0))],
        out_specs=pl.BlockSpec((B, 1), lambda i: (0, 0)),
    )(a.astype(jnp.float32), b.astype(jnp.float32), y, w)
    return out[:, 0]


# ---------------------------------------------------------------------------
# Jitted device-side composites (few dispatches per forward / per speaker)
# ---------------------------------------------------------------------------
@jax.jit
def _proj_and_init_vad(enc, proj_wt, proj_b, spk_vec, y, w):
    B, T, D = enc.shape
    femb = linear_pallas(enc.reshape(B * T, D), proj_wt, proj_b)
    femb = femb.reshape(B, T, -1)
    return femb, wbce_vad_batched(femb, spk_vec, y, w)


@jax.jit
def _adder_path(chosen_all, pad_idx, lengths, wi_t, bi, wh_t, bh, h0):
    # gi hoisted out of the recurrence -> one MXU matmul, then blocked scan.
    Lp, NBp = pad_idx.shape
    D = chosen_all.shape[1]
    # TODO(synk): the (Lp,NBp,D) gather could be fused into the gi linear via
    # scalar-prefetched pl.Element row-gather BlockSpecs; kept as an XLA gather.
    xpad = chosen_all[pad_idx]
    gi = linear_pallas(xpad.reshape(Lp * NBp, D), wi_t, bi)
    gi = gi.reshape(Lp, NBp, -1)
    out, hT = adder_scan_pallas(gi, lengths, wh_t, bh, h0)
    return out.reshape(Lp * NBp, -1), hT


@jax.jit
def _spk_loss_path(femb, adder_out_flat, gidx, y, w):
    hidden = adder_out_flat[gidx]                              # (B, T, H) gather
    return wbce_pair_batched(femb, hidden, y, w)


@partial(jax.jit, donate_argnums=(0,))
def _miner_scatter_vad(femb, x_pad, adder_hT, h_rows_pad, bids, fids,
                       spk_vec, y, w, wi_t, wh_t, bi, bh):
    h_in = adder_hT[h_rows_pad]                                # (Np, H)
    upd = gru_cell_pallas(x_pad, h_in, wi_t, wh_t, bi, bh)     # miner GRU step
    upd = upd[: bids.shape[0]]                                 # drop pad rows
    new_femb = femb.at[bids, fids].set(upd)                    # in-place (donated)
    vad = wbce_vad_batched(new_femb, spk_vec, y, w)
    return new_femb, vad


# ---------------------------------------------------------------------------
# Parameter initialization (mirrors __init__ shapes; matmul weights in bf16)
# ---------------------------------------------------------------------------
def init_params(key, n_units, mxu_dtype=MXU_DTYPE):
    D = n_units
    bound = 1.0 / np.sqrt(D)
    ks = jax.random.split(key, 10)

    def u(k, shape):
        return jax.random.uniform(k, shape, jnp.float32, -bound, bound)

    def gru_params(k0, k1, k2, k3):
        return {
            "wi_t": u(k0, (3 * D, D)).T.astype(mxu_dtype),     # stored (D, 3D)
            "wh_t": u(k1, (3 * D, D)).T.astype(mxu_dtype),     # stored (D, 3D)
            "bi": u(k2, (3 * D,)).reshape(1, 3 * D),
            "bh": u(k3, (3 * D,)).reshape(1, 3 * D),
        }

    return {
        "proj_wt": u(ks[0], (D, D)).T.astype(mxu_dtype),       # (Din, Dout)
        "proj_b": u(ks[1], (D,)).reshape(1, D),
        "rnn_init_hidden": jnp.zeros((1, D), jnp.float32),
        "adder": gru_params(ks[2], ks[3], ks[4], ks[5]),
        "miner": gru_params(ks[6], ks[7], ks[8], ks[9]),
    }


# ---------------------------------------------------------------------------
# forward()  (frameRNN_dec.forward semantics; dropout = eval-mode identity)
# ---------------------------------------------------------------------------
def frame_rnn_dec_forward(params, enc_output, seq_len, label):
    """
    enc_output: (B, T, D) f32 ; seq_len: (B,) int ; label: (B, T, C) f32
    returns (batch_spk_loss (B,), frame_active_loss (B,))
    """
    label_np = np.asarray(label, np.float32)
    seq_np = np.asarray(seq_len).astype(np.int64)
    B, T, C = label_np.shape
    spk_vec = params["rnn_init_hidden"]                        # (1, D)

    # TODO(synk): nonzero / sort / pack_sequence / repeat_interleave index
    # bookkeeping is inherently data dependent and stays on the host, exactly
    # mirroring the PyTorch control flow; only index arrays go to the device.
    spk_active_frames = []
    for b in range(B):
        cols = [np.nonzero(label_np[b, :, c])[0] for c in range(C)]
        cols.sort(key=lambda x: int(x[0]) if len(x) != 0 else T + 1)
        spk_active_frames.append(cols)

    spk_in_frame = label_np.sum(axis=-1)                       # (B, T), mutated below
    valid_frames = seq_np.astype(np.float32) + spk_in_frame.sum(axis=-1)

    # ----- enc_dec_proj + initial per-frame VAD loss (one batched call) -------
    y0 = np.zeros((B, T), np.float32)
    w0 = np.zeros((B, T), np.float32)
    for i in range(B):
        L = int(seq_np[i])
        lab = (spk_in_frame[i, :L] > 0).astype(np.float32)
        s = lab.sum()
        y0[i, :L] = lab
        w0[i, :L] = np.where(lab == 1, L / (s + 1e-9),
                             L / (L - s + 1e-9)).astype(np.float32)
    frame_emb, frame_active_loss = _proj_and_init_vad(
        jnp.asarray(enc_output, jnp.float32), params["proj_wt"],
        params["proj_b"], spk_vec, jnp.asarray(y0), jnp.asarray(w0))
    batch_spk_loss = jnp.zeros((B,), jnp.float32)

    ad, mi = params["adder"], params["miner"]

    # ----- speaker loop (serial: miner of spk s feeds adder of spk s+1) -------
    for spk_id in range(C):
        chosen_ids = [spk_active_frames[b][spk_id].astype(np.int64)
                      for b in range(B)]
        nonempty = [b for b in range(B) if len(chosen_ids[b]) > 0]
        if not nonempty:
            continue
        lens = [len(chosen_ids[b]) for b in nonempty]
        NB, Lmax = len(nonempty), max(lens)
        NBp = _round_up(NB, SUB)                 # pad rows to sublane multiple
        Lp = _round_up(Lmax, TBLK)               # pad time to TBLK multiple
        Ntot = int(sum(lens))
        Np = _round_up(Ntot, SUB)
        offsets = np.cumsum([0] + lens)

        bids = np.concatenate([np.full(len(ids), b, np.int32)
                               for b, ids in enumerate(chosen_ids)]).astype(np.int32)
        fids = np.concatenate([ids for ids in chosen_ids]).astype(np.int32)
        bids_pad = np.zeros((Np,), np.int32); bids_pad[:Ntot] = bids
        fids_pad = np.zeros((Np,), np.int32); fids_pad[:Ntot] = fids

        pad_idx = np.zeros((Lp, NBp), np.int32)
        lengths = np.zeros((NBp, 1), np.int32)
        for j in range(NB):
            pad_idx[:lens[j], j] = offsets[j] + np.arange(lens[j])
            lengths[j, 0] = lens[j]

        # chosen frames gathered once (adder input == miner input); padded rows
        # reference (0,0) and are masked / sliced off downstream.
        chosen_all = frame_emb[jnp.asarray(bids_pad), jnp.asarray(fids_pad)]  # (Np, D)

        # adder GRU: batched over NBp rows, time-blocked fused scan
        adder_out_flat, adder_hT = _adder_path(
            chosen_all, jnp.asarray(pad_idx), jnp.asarray(lengths),
            ad["wi_t"], ad["bi"], ad["wh_t"], ad["bh"], spk_vec)

        # ----- per-batch speaker-activity loss (one batched kernel) -----------
        gidx = np.zeros((B, T), np.int32)
        y_spk = np.zeros((B, T), np.float32)
        w_spk = np.zeros((B, T), np.float32)
        inv_L = np.zeros((B,), np.float32)
        for j, b in enumerate(nonempty):
            ids = chosen_ids[b]
            st, Lend = int(ids[0]), int(seq_np[b])
            L = Lend - st - 1
            if L <= 0:                       # first active frame is the last frame
                continue
            rep = np.concatenate([ids[1:], [Lend - 1]]) - ids          # repeat counts
            steps = np.repeat(np.arange(len(ids)), rep)                # adder step / row
            pos = np.arange(st + 1, Lend)
            gidx[b, pos] = (steps * NBp + j).astype(np.int32)
            lab = np.zeros((L,), np.float32)
            lab[ids[1:] - st - 1] = 1.0
            s = lab.sum()
            y_spk[b, pos] = lab
            w_spk[b, pos] = np.where(lab == 1, L / (s + 1e-9),
                                     L / (L - s + 1e-9)).astype(np.float32)
            inv_L[b] = 1.0 / L               # BCE 'mean' reduction
        if np.any(w_spk != 0.0):
            sums = _spk_loss_path(frame_emb, adder_out_flat, jnp.asarray(gidx),
                                  jnp.asarray(y_spk), jnp.asarray(w_spk))
            batch_spk_loss = batch_spk_loss + sums * jnp.asarray(inv_L)

        # ----- miner GRU + in-place scatter + mined-frame VAD loss ------------
        h_rows_pad = np.zeros((Np,), np.int32)
        h_rows_pad[:Ntot] = np.concatenate([np.full(lens[j], j, np.int32)
                                            for j in range(NB)])
        y_vad = np.zeros((B, T), np.float32)
        w_vad = np.zeros((B, T), np.float32)
        for b in nonempty:
            ids = chosen_ids[b]
            n_i = len(ids)
            spk_in_frame[b, ids] -= 1.0
            lab = (spk_in_frame[b, ids] > 0).astype(np.float32)
            s = lab.sum()
            # exact reproduction of the original's double masked_fill on (label==0):
            # weight = 1.0 at positives, n/(n-s+eps) at negatives
            y_vad[b, ids] = lab
            w_vad[b, ids] = np.where(lab == 0, n_i / (n_i - s + 1e-9),
                                     1.0).astype(np.float32)
        frame_emb, vad_sums = _miner_scatter_vad(
            frame_emb, chosen_all, adder_hT, jnp.asarray(h_rows_pad),
            jnp.asarray(bids), jnp.asarray(fids), spk_vec,
            jnp.asarray(y_vad), jnp.asarray(w_vad),
            mi["wi_t"], mi["wh_t"], mi["bi"], mi["bh"])
        frame_active_loss = frame_active_loss + vad_sums

    batch_spk_loss = batch_spk_loss / float(C)
    frame_active_loss = frame_active_loss / (
        jnp.asarray(valid_frames, jnp.float32) + 1e-5)
    return batch_spk_loss, frame_active_loss


# ---------------------------------------------------------------------------
# main
# ---------------------------------------------------------------------------
if __name__ == "__main__":
    # n_units = 128 so GRU gate slices and all kernel blocks are 128-lane aligned.
    B, T, D, C = 2, 16, 128, 3          # batch, frames, n_units, n_speakers

    key = jax.random.PRNGKey(0)
    k_param, k_enc, k_lab = jax.random.split(key, 3)

    params = init_params(k_param, D)

    enc_output = jax.random.normal(k_enc, (B, T, D), jnp.float32)
    seq_len = np.array([16, 12], np.int32)

    lab = np.asarray(jax.random.bernoulli(k_lab, 0.35, (B, T, C))).astype(np.float32)
    for b in range(B):
        lab[b, seq_len[b]:, :] = 0.0
        for c in range(C):
            if lab[b, :seq_len[b], c].sum() == 0:   # keep every speaker non-empty
                lab[b, (2 * c + b) % (seq_len[b] - 1), c] = 1.0
    label = jnp.asarray(lab)

    spk_loss, vad_loss = frame_rnn_dec_forward(params, enc_output, seq_len, label)
    jax.block_until_ready((spk_loss, vad_loss))

    assert spk_loss.shape == (B,) and vad_loss.shape == (B,)
    assert bool(jnp.all(jnp.isfinite(spk_loss))) and bool(jnp.all(jnp.isfinite(vad_loss)))
    print("KERNEL_OK")
</pallas_src>

<mosaic_0001>
module attributes {stable_mosaic.version = 11 : i64} {
  func.func @_linear_kernel(%arg0: i32, %arg1: memref<32x128xf32, #tpu.memory_space<vmem>>, %arg2: memref<128x128xbf16, #tpu.memory_space<vmem>>, %arg3: memref<1x128xf32, #tpu.memory_space<vmem>>, %arg4: memref<32x128xf32, #tpu.memory_space<vmem>>) attributes {dimension_semantics = [#tpu.dimension_semantics<parallel>], iteration_bounds = array<i64: 1>, scalar_prefetch = 0 : i64, scratch_operands = 0 : i64, tpu.core_type = #tpu.core_type<tc>, window_params = [{transform_indices = @transform_0, window_bounds = array<i64: 32, 128>}, {pipeline_mode = #tpu.pipeline_mode<synchronous>, transform_indices = @transform_1, window_bounds = array<i64: 128, 128>}, {pipeline_mode = #tpu.pipeline_mode<synchronous>, transform_indices = @transform_2, window_bounds = array<i64: 1, 128>}, {transform_indices = @transform_3, window_bounds = array<i64: 32, 128>}]} {
    %c0 = arith.constant 0 : index
    %c0_0 = arith.constant 0 : index
    %0 = vector.load %arg2[%c0, %c0_0] : memref<128x128xbf16, #tpu.memory_space<vmem>>, vector<128x128xbf16>
    %c0_1 = arith.constant 0 : index
    %c0_2 = arith.constant 0 : index
    %1 = vector.load %arg1[%c0_1, %c0_2] : memref<32x128xf32, #tpu.memory_space<vmem>>, vector<32x128xf32>
    %2 = arith.truncf %1 : vector<32x128xf32> to vector<32x128xbf16>
    %cst = arith.constant dense<0.000000e+00> : vector<32x128xf32>
    %3 = tpu.matmul %2, %0, %cst {dimension_numbers = #tpu.dot_dimension_numbers<[1], [0], [0], [1], [0, 0, 1, 1], [], []>} : vector<32x128xbf16>, vector<128x128xbf16>, vector<32x128xf32> -> vector<32x128xf32>
    %c0_3 = arith.constant 0 : index
    %c0_4 = arith.constant 0 : index
    %4 = vector.load %arg3[%c0_3, %c0_4] : memref<1x128xf32, #tpu.memory_space<vmem>>, vector<1x128xf32>
    %5 = vector.broadcast %4 : vector<1x128xf32> to vector<32x128xf32>
    %6 = arith.addf %3, %5 : vector<32x128xf32>
    %c0_5 = arith.constant 0 : index
    %c0_6 = arith.constant 0 : index
    %7 = vector.load %arg4[%c0_5, %c0_6] : memref<32x128xf32, #tpu.memory_space<vmem>>, vector<32x128xf32>
    tpu.vector_store %arg4[%c0_5, %c0_6], %6 {strides = array<i32>} : memref<32x128xf32, #tpu.memory_space<vmem>>, vector<32x128xf32>,
    return
  }
  func.func @transform_0(%arg0: i32) -> (i32, i32) {
    %c0_i32 = arith.constant 0 : i32
    %c0_i32_0 = arith.constant 0 : i32
    return %arg0, %c0_i32 : i32, i32
  }
  func.func @transform_1(%arg0: i32) -> (i32, i32) {
    %c0_i32 = arith.constant 0 : i32
    %c0_i32_0 = arith.constant 0 : i32
    %c0_i32_1 = arith.constant 0 : i32
    return %c0_i32, %c0_i32_0 : i32, i32
  }
  func.func @transform_2(%arg0: i32) -> (i32, i32) {
    %c0_i32 = arith.constant 0 : i32
    %c0_i32_0 = arith.constant 0 : i32
    %c0_i32_1 = arith.constant 0 : i32
    return %c0_i32, %c0_i32_0 : i32, i32
  }
  func.func @transform_3(%arg0: i32) -> (i32, i32) {
    %c0_i32 = arith.constant 0 : i32
    %c0_i32_0 = arith.constant 0 : i32
    return %arg0, %c0_i32 : i32, i32
  }
}

module attributes {stable_mosaic.version = 11 : i64} {
  func.func @_wbce_vad_kernel(%arg0: i32, %arg1: memref<2x16x128xf32, #tpu.memory_space<vmem>>, %arg2: memref<1x128xf32, #tpu.memory_space<vmem>>, %arg3: memref<2x16xf32, #tpu.memory_space<vmem>>, %arg4: memref<2x16xf32, #tpu.memory_space<vmem>>, %arg5: memref<2x1xf32, #tpu.memory_space<vmem>>) attributes {dimension_semantics = [#tpu.dimension_semantics<arbitrary>], iteration_bounds = array<i64: 1>, scalar_prefetch = 0 : i64, scratch_operands = 0 : i64, tpu.core_type = #tpu.core_type<tc>, window_params = [{pipeline_mode = #tpu.pipeline_mode<synchronous>, transform_indices = @transform_0, window_bounds = array<i64: 2, 16, 128>}, {pipeline_mode = #tpu.pipeline_mode<synchronous>, transform_indices = @transform_1, window_bounds = array<i64: 1, 128>}, {pipeline_mode = #tpu.pipeline_mode<synchronous>, transform_indices = @transform_2, window_bounds = array<i64: 2, 16>}, {pipeline_mode = #tpu.pipeline_mode<synchronous>, transform_indices = @transform_3, window_bounds = array<i64: 2, 16>}, {pipeline_mode = #tpu.pipeline_mode<synchronous>, transform_indices = @transform_4, window_bounds = array<i64: 2, 1>}]} {
    %c0 = arith.constant 0 : index
    %c0_0 = arith.constant 0 : index
    %c0_1 = arith.constant 0 : index
    %0 = vector.load %arg1[%c0, %c0_0, %c0_1] : memref<2x16x128xf32, #tpu.memory_space<vmem>>, vector<2x16x128xf32>
    %c0_2 = arith.constant 0 : index
    %c0_3 = arith.constant 0 : index
    %1 = vector.load %arg2[%c0_2, %c0_3] : memref<1x128xf32, #tpu.memory_space<vmem>>, vector<1x128xf32>
    %2 = vector.shape_cast %1 : vector<1x128xf32> to vector<1x1x128xf32>
    %3 = vector.broadcast %2 : vector<1x1x128xf32> to vector<2x16x128xf32>
    %4 = arith.mulf %0, %3 : vector<2x16x128xf32>
    %cst = arith.constant dense<0.000000e+00> : vector<2x16xf32>
    %5 = vector.multi_reduction <add>, %4, %cst [2] : vector<2x16x128xf32> to vector<2x16xf32>
    %c0_4 = arith.constant 0 : index
    %c0_5 = arith.constant 0 : index
    %6 = vector.load %arg3[%c0_4, %c0_5] : memref<2x16xf32, #tpu.memory_space<vmem>>, vector<2x16xf32>
    %c0_6 = arith.constant 0 : index
    %c0_7 = arith.constant 0 : index
    %7 = vector.load %arg4[%c0_6, %c0_7] : memref<2x16xf32, #tpu.memory_space<vmem>>, vector<2x16xf32>
    %cst_8 = arith.constant 0.000000e+00 : f32
    %8 = vector.broadcast %cst_8 : f32 to vector<2x16xf32>
    %9 = arith.subf %8, %7 : vector<2x16xf32>
    %cst_9 = arith.constant 0.000000e+00 : f32
    %10 = vector.broadcast %cst_9 : f32 to vector<2x16xf32>
    %11 = arith.minimumf %5, %10 : vector<2x16xf32>
    %12 = math.absf %5 : vector<2x16xf32>
    %cst_10 = arith.constant 0.000000e+00 : f32
    %13 = vector.broadcast %cst_10 : f32 to vector<2x16xf32>
    %14 = arith.subf %13, %12 : vector<2x16xf32>
    %15 = math.exp %14 : vector<2x16xf32>
    %cst_11 = arith.constant 1.000000e+00 : f32
    %16 = vector.broadcast %cst_11 : f32 to vector<2x16xf32>
    %17 = arith.addf %16, %15 : vector<2x16xf32>
    %18 = math.log %17 : vector<2x16xf32>
    %19 = arith.subf %11, %18 : vector<2x16xf32>
    %cst_12 = arith.constant -1.000000e+02 : f32
    %20 = vector.broadcast %cst_12 : f32 to vector<2x16xf32>
    %21 = arith.maximumf %19, %20 : vector<2x16xf32>
    %22 = arith.mulf %6, %21 : vector<2x16xf32>
    %cst_13 = arith.constant 1.000000e+00 : f32
    %23 = vector.broadcast %cst_13 : f32 to vector<2x16xf32>
    %24 = arith.subf %23, %6 : vector<2x16xf32>
    %cst_14 = arith.constant 0.000000e+00 : f32
    %25 = vector.broadcast %cst_14 : f32 to vector<2x16xf32>
    %26 = arith.subf %25, %5 : vector<2x16xf32>
    %cst_15 = arith.constant 0.000000e+00 : f32
    %27 = vector.broadcast %cst_15 : f32 to vector<2x16xf32>
    %28 = arith.minimumf %26, %27 : vector<2x16xf32>
    %29 = math.absf %26 : vector<2x16xf32>
    %cst_16 = arith.constant 0.000000e+00 : f32
    %30 = vector.broadcast %cst_16 : f32 to vector<2x16xf32>
    %31 = arith.subf %30, %29 : vector<2x16xf32>
    %32 = math.exp %31 : vector<2x16xf32>
    %cst_17 = arith.constant 1.000000e+00 : f32
    %33 = vector.broadcast %cst_17 : f32 to vector<2x16xf32>
    %34 = arith.addf %33, %32 : vector<2x16xf32>
    %35 = math.log %34 : vector<2x16xf32>
    %36 = arith.subf %28, %35 : vector<2x16xf32>
    %cst_18 = arith.constant -1.000000e+02 : f32
    %37 = vector.broadcast %cst_18 : f32 to vector<2x16xf32>
    %38 = arith.maximumf %36, %37 : vector<2x16xf32>
    %39 = arith.mulf %24, %38 : vector<2x16xf32>
    %40 = arith.addf %22, %39 : vector<2x16xf32>
    %41 = arith.mulf %9, %40 : vector<2x16xf32>
    %cst_19 = arith.constant dense<0.000000e+00> : vector<2xf32>
    %42 = vector.multi_reduction <add>, %41, %cst_19 [1] : vector<2x16xf32> to vector<2xf32>
    %43 = vector.shape_cast %42 : vector<2xf32> to vector<2x1xf32>
    %c0_20 = arith.constant 0 : index
    %c0_21 = arith.constant 0 : index
    %44 = vector.load %arg5[%c0_20, %c0_21] : memref<2x1xf32, #tpu.memory_space<vmem>>, vector<2x1xf32>
    tpu.vector_store %arg5[%c0_20, %c0_21], %43 {strides = array<i32>} : memref<2x1xf32, #tpu.memory_space<vmem>>, vector<2x1xf32>,
    return
  }
  func.func @transform_0(%arg0: i32) -> (i32, i32, i32) {
    %c0_i32 = arith.constant 0 : i32
    %c0_i32_0 = arith.constant 0 : i32
    %c0_i32_1 = arith.constant 0 : i32
    %c0_i32_2 = arith.constant 0 : i32
    return %c0_i32, %c0_i32_0, %c0_i32_1 : i32, i32, i32
  }
  func.func @transform_1(%arg0: i32) -> (i32, i32) {
    %c0_i32 = arith.constant 0 : i32
    %c0_i32_0 = arith.constant 0 : i32
    %c0_i32_1 = arith.constant 0 : i32
    return %c0_i32, %c0_i32_0 : i32, i32
  }
  func.func @transform_2(%arg0: i32) -> (i32, i32) {
    %c0_i32 = arith.constant 0 : i32
    %c0_i32_0 = arith.constant 0 : i32
    %c0_i32_1 = arith.constant 0 : i32
    return %c0_i32, %c0_i32_0 : i32, i32
  }
  func.func @transform_3(%arg0: i32) -> (i32, i32) {
    %c0_i32 = arith.constant 0 : i32
    %c0_i32_0 = arith.constant 0 : i32
    %c0_i32_1 = arith.constant 0 : i32
    return %c0_i32, %c0_i32_0 : i32, i32
  }
  func.func @transform_4(%arg0: i32) -> (i32, i32) {
    %c0_i32 = arith.constant 0 : i32
    %c0_i32_0 = arith.constant 0 : i32
    %c0_i32_1 = arith.constant 0 : i32
    return %c0_i32, %c0_i32_0 : i32, i32
  }
}

</mosaic_0001>

<bundles_post_ra>
// kernel: _proj_and_init_vad.2
= control target key start
LH: loop header
LB: loop body
LE: loop exit
PB: predicated region body
PF: predicated region fallthrough
CT: control target
= control target key end

     0   :  { %8 = vsyncpa [#allocation3], 0  ;;  %s323_s0 = inlined_call_operand.hbm [shape: f32[32,128], index: 0, kind: input, shape index: {}]   ;;  %s324_s1 = inlined_call_operand.hbm [shape: bf16[128,128], index: 1, kind: input, shape index: {}]   ;;  %s325_s2 = inlined_call_operand.vmem [shape: f32[1,128], index: 2, kind: input, shape index: {}]   ;;  %s326_s3 = inlined_call_operand.vmem [shape: f32[32,128], index: 3, kind: output, shape index: {}]  }
   0x1   :  { %9 = vsyncpa [#allocation5], 0  ;;  %s276_s12 = smov [#allocation2]  }
   0x2   :  { %s15_s13 = sshll.u32 %s276_s12, 4  ;;  %s16_s13 = int_to_ptr.vmem [resolvable:$true] %s15_s13 }
   0x3   :  { %s240_s14 = scalar_lea.vmem %s16_s13, 512  ;;  %p245_p1 = scmp.lt.s32.totalorder %s16_s13, %s16_s13 }
   0x4   :  { %p241_p0 = scmp.ne.s32.totalorder %s16_s13, %s240_s14  ;;  %p246_p2 = scmp.lt.s32.totalorder %s240_s14, %s240_s14 }
   0x6   :  { %p247_p3 = por %p246_p2, %p245_p1 }
   0x8   :  { %p248_p4 = pnand %p247_p3, %p241_p0 }
   0xa   :  { %251 = shalt.err (!%p248_p4)
}
   0xb   :  { %s277_s15 = smov 128   ;;  %s278_s16 = smov 8  }
   0xc   :  { %21 = dma.hbm_to_vmem [thread:$0]  %s323_s0, 512, %s16_s13, [#allocation3], %s277_s15, %s277_s15, %s278_s16  }
   0xd   :  { %s279_s19 = smov [#allocation4]  }
   0xe   :  { %s27_s20 = sshll.u32 %s279_s19, 4  ;;  %s28_s20 = int_to_ptr.vmem [resolvable:$true] %s27_s20 }
   0xf   :  { %s260_s21 = scalar_lea.vmem %s28_s20, 1024  ;;  %p265_p6 = scmp.lt.s32.totalorder %s28_s20, %s28_s20 }
  0x10   :  { %p261_p5 = scmp.ne.s32.totalorder %s28_s20, %s260_s21  ;;  %p266_p7 = scmp.lt.s32.totalorder %s260_s21, %s260_s21 }
  0x12   :  { %p267_p8 = por %p266_p7, %p265_p6 }
  0x14   :  { %p268_p9 = pnand %p267_p8, %p261_p5 }
  0x16   :  { %271 = shalt.err (!%p268_p9)
}
  0x17   :  { %s280_s22 = smov 64   ;;  %s281_s23 = smov 4  }
  0x18   :  { %33 = dma.hbm_to_vmem [thread:$0]  %s324_s1, 1024, %s28_s20, [#allocation5], %s280_s22, %s280_s22, %s281_s23  }
  0x19   :  { %272 = dma.done.wait [#allocation3], 512  }
  0x1a   :  { %273 = vsyncadd [#allocation3], 4294966784 }
  0x1b   :  { %274 = dma.done.wait [#allocation5], 1024  }
  0x1c   :  { %275 = vsyncadd [#allocation5], 4294966272  ;;  %v224_v0 = vld [vmem:[#allocation4 + $0x38] sm:$0xff]   ;;  %v225_v1 = vld [vmem:[#allocation4 + $0x30] sm:$0xff]  }
  0x1d   :  { %198 = vmatprep.subr.bf16.mxu0 %v224_v0  ;;  %v226_v2 = vld [vmem:[#allocation4 + $0x28] sm:$0xff]   ;;  %v227_v3 = vld [vmem:[#allocation4 + $0x20] sm:$0xff]   ;;  %v228_v7 = vld [vmem:[#allocation4 + $0x18] sm:$0xff]  }
  0x1e   :  { %199 = vmatpush3.bf16.msra.mxu0 %v224_v0  ;;  %v59_v4 = vld [vmem:[#allocation2] sm:$0xff]  ;;  %v60_v5 = vld [vmem:[#allocation2 + $0x8] sm:$0xff]  ;;  %v229_v8 = vld [vmem:[#allocation4 + $0x10] sm:$0xff]  }
  0x1f   :  { %200 = vmatprep.subr.bf16.mxu0 %v225_v1  ;;  %v63_v6 = vpack.c.bf16 %v60_v5, %v59_v4  ;;  %v230_v9 = vld [vmem:[#allocation4 + $0x8] sm:$0xff]   ;;  %v231_v10 = vld [vmem:[#allocation4] sm:$0xff]   ;;  %v61_v11 = vld [vmem:[#allocation2 + $0x10] sm:$0xff] }
  0x20   :  { %v62_v12 = vld [vmem:[#allocation2 + $0x18] sm:$0xff]  ;;  %v179_v14 = vld [vmem:[%s325_s2] ss:$0 sm:$0xff] }
  0x21   :  { %214 = vmatprep.mubr.bf16.mxu0 %v63_v6  ;;  %v64_v13 = vpack.c.bf16 %v62_v12, %v61_v11 }
  0x22   :  { %201 = vmatpush3.bf16.msra.mxu0 %v225_v1 }
  0x23   :  { %202 = vmatprep.subr.bf16.mxu0 %v226_v2 }
  0x26   :  { %203 = vmatpush3.bf16.msra.mxu0 %v226_v2 }
  0x27   :  { %204 = vmatprep.subr.bf16.mxu0 %v227_v3 }
  0x2a   :  { %205 = vmatpush3.bf16.msra.mxu0 %v227_v3 }
  0x2b   :  { %206 = vmatprep.subr.bf16.mxu0 %v228_v7 }
  0x2e   :  { %207 = vmatpush3.bf16.msra.mxu0 %v228_v7 }
  0x2f   :  { %208 = vmatprep.subr.bf16.mxu0 %v229_v8 }
  0x32   :  { %209 = vmatpush3.bf16.msra.mxu0 %v229_v8 }
  0x33   :  { %210 = vmatprep.subr.bf16.mxu0 %v230_v9 }
  0x36   :  { %211 = vmatpush3.bf16.msra.mxu0 %v230_v9 }
  0x37   :  { %212 = vmatprep.subr.bf16.mxu0 %v231_v10 }
  0x3a   :  { %213 = vmatpush3.bf16.msra.mxu0 %v231_v10 }
  0x3d   :  { %215 = vmatmul.mubr.bf16.vlgmr.msra.gmra.mxu0 %v64_v13 }
  0xfd   :  { %v216_v15 = vpop.f32.mrf.mxu0 }
  0xfe   :  { %v163_v16 = vadd.f32 %v216_v15, %v179_v14 }
  0xff   :  { %v154_v17 = vpop.f32.mrf.mxu0 }
 0x100   :  { %171 = vst [vmem:[%s326_s3 + $0x10] sm:$0xff] %v163_v16  ;;  %v155_v18 = vadd.f32 %v179_v14, %v154_v17 }
 0x101   :  { %v217_v19 = vpop.f32.mrf.mxu0 }
 0x102   :  { %169 = vst [vmem:[%s326_s3] sm:$0xff] %v155_v18  ;;  %v166_v20 = vadd.f32 %v217_v19, %v179_v14 }
 0x103   :  { %v157_v21 = vpop.f32.mrf.mxu0 }
 0x104   :  { %172 = vst [vmem:[%s326_s3 + $0x18] sm:$0xff] %v166_v20  ;;  %v158_v22 = vadd.f32 %v179_v14, %v157_v21 }
 0x106   :  { %170 = vst [vmem:[%s326_s3 + $0x8] sm:$0xff] %v158_v22 }
 0x107   :  { %177 = vsyncpa [#allocation3], 1 }
 0x108   :  { %178 = vsyncpa [#allocation5], 1 }

// kernel: _proj_and_init_vad.3
= control target key start
LH: loop header
LB: loop body
LE: loop exit
PB: predicated region body
PF: predicated region fallthrough
CT: control target
= control target key end

     0   :  { %v87_v57 = vlaneseq  ;;  %vm98_vm0 = vcmask 130112   ;;  %vm109_vm1 = vcmask 1041409   ;;  %vm185_vm2 = vcmask 123904   ;;  %s317_s0 = inlined_call_operand.vmem [shape: f32[2,16,128], index: 0, kind: input, shape index: {}]   ;;  %s318_s1 = inlined_call_operand.vmem [shape: f32[1,128], index: 1, kind: input, shape index: {}]   ;;  %s319_s2 = inlined_call_operand.vmem [shape: f32[2,16], index: 2, kind: input, shape index: {}]   ;;  %s320_s3 = inlined_call_operand.vmem [shape: f32[2,16], index: 3, kind: input, shape index: {}]   ;;  %s321_s4 = inlined_call_operand.vmem [shape: f32[2,1], index: 4, kind: output, shape index: {}]  }
   0x1   :  { %v19_v0 = vld [vmem:[%s317_s0 + $0x10] sm:$0xff]  ;;  %v195_v1 = vld [vmem:[%s318_s1] ss:$0 sm:$0xff]  ;;  %v20_v5 = vld [vmem:[%s317_s0 + $0x18] sm:$0xff]  ;;  %vm189_vm3 = vcmask 1024  }
   0x2   :  { %v17_v2 = vld [vmem:[%s317_s0] sm:$0xff]  ;;  %v30_v3 = vmul.f32 %v195_v1, %v19_v0  ;;  %v18_v6 = vld [vmem:[%s317_s0 + $0x8] sm:$0xff]  ;;  %v31_v7 = vmul.f32 %v195_v1, %v20_v5  ;;  %v88_v59 = vand.u32 127, %v87_v57 }
   0x3   :  { %v28_v4 = vmul.f32 %v195_v1, %v17_v2  ;;  %v29_v8 = vmul.f32 %v195_v1, %v18_v6  ;;  %v90_v6 = vshrl.u32 %v87_v57, 7 }
   0x4   :  { %36 = vadd.xlane.f32.xlu1 %v30_v3  ;;  %v93_v1 = vadd.s32 4294967288, %v88_v59 }
   0x5   :  { %32 = vadd.xlane.f32.xlu0 %v28_v4 }
   0x8   :  { %38 = vadd.xlane.f32.xlu1 %v31_v7 }
   0x9   :  { %34 = vadd.xlane.f32.xlu0 %v29_v8 }
  0x8d   :  { %v268_v9 = vpop.xlane.xlu1 %36 }
  0x8e   :  { %v270_v10 = vpop.xlane.xlu0 %32  ;;  %v49_v11 = vand.u32 2147483647, %v268_v9  ;;  %v116_v12 = vsub.f32 0.0, %v268_v9  ;;  %v45_v63 = vmin.f32 %v268_v9, 0.0 }
  0x8f   :  { %v47_v13 = vand.u32 2147483647, %v270_v10  ;;  %v114_v14 = vsub.f32 0.0, %v270_v10  ;;  %v43_v4 = vmin.f32 %v270_v10, 0.0 }
  0x90   :  { %v53_v15 = vsub.f32 0.0, %v49_v11  ;;  %v124_v16 = vand.u32 2147483647, %v116_v12  ;;  %v120_v8 = vmin.f32 %v116_v12, 0.0 }
  0x91   :  { %v51_v17 = vsub.f32 0.0, %v47_v13  ;;  %v122_v18 = vand.u32 2147483647, %v114_v14  ;;  %v280_v19 = vpop.xlane.xlu1 %38 }
  0x92   :  { %v282_v20 = vpop.xlane.xlu0 %34  ;;  %v59_v21 = vmul.f32 1.442695, %v53_v15  ;;  %v128_v22 = vsub.f32 0.0, %v124_v16  ;;  %v50_v23 = vand.u32 2147483647, %v280_v19  ;;  %v117_v26 = vsub.f32 0.0, %v280_v19 }
  0x93   :  { %v55_v24 = vmul.f32 1.442695, %v51_v17  ;;  %v126_v25 = vsub.f32 0.0, %v122_v18  ;;  %v48_v29 = vand.u32 2147483647, %v282_v20  ;;  %v115_v34 = vsub.f32 0.0, %v282_v20 }
  0x94   :  { %196 = vpow2.f32 %v59_v21  ;;  %v134_v27 = vmul.f32 1.442695, %v128_v22  ;;  %v54_v28 = vsub.f32 0.0, %v50_v23  ;;  %v125_v31 = vand.u32 2147483647, %v117_v26 }
  0x95   :  { %198 = vpow2.f32 %v55_v24  ;;  %v130_v30 = vmul.f32 1.442695, %v126_v25  ;;  %v52_v33 = vsub.f32 0.0, %v48_v29  ;;  %v123_v37 = vand.u32 2147483647, %v115_v34 }
  0x96   :  { %200 = vpow2.f32 %v134_v27  ;;  %v61_v32 = vmul.f32 1.442695, %v54_v28  ;;  %v129_v35 = vsub.f32 0.0, %v125_v31  ;;  %v46_v15 = vmin.f32 %v280_v19, 0.0 }
  0x97   :  { %202 = vpow2.f32 %v130_v30  ;;  %v57_v36 = vmul.f32 1.442695, %v52_v33  ;;  %v127_v39 = vsub.f32 0.0, %v123_v37  ;;  %v118_v18 = vmin.f32 %v114_v14, 0.0 }
  0x98   :  { %204 = vpow2.f32 %v61_v32  ;;  %v136_v38 = vmul.f32 1.442695, %v129_v35  ;;  %v96_v21 = vsub.s32 %v93_v1, %v90_v6  ;;  %v44_v25 = vmin.f32 %v282_v20, 0.0 }
  0x99   :  { %206 = vpow2.f32 %v57_v36  ;;  %v132_v40 = vmul.f32 1.442695, %v127_v39  ;;  %v91_v28 = vsub.s32 %v88_v59, %v90_v6  ;;  %v121_v9 = vmin.f32 %v117_v26, 0.0 }
  0x9a   :  { %208 = vpow2.f32 %v136_v38  ;;  %v119_v14 = vmin.f32 %v115_v34, 0.0 }
  0x9b   :  { %210 = vpow2.f32 %v132_v40 }
  0xa1   :  { %v197_v41 = vpop.eup %196 }
  0xa2   :  { %v199_v42 = vpop.eup %198  ;;  %v65_v43 = vadd.f32 1.0, %v197_v41 }
  0xa3   :  { %v201_v44 = vpop.eup %200  ;;  %v63_v45 = vadd.f32 1.0, %v199_v42 }
  0xa4   :  { %v203_v46 = vpop.eup %202  ;;  %212 = vlog2.f32 %v65_v43  ;;  %v140_v47 = vadd.f32 1.0, %v201_v44 }
  0xa5   :  { %v205_v48 = vpop.eup %204  ;;  %214 = vlog2.f32 %v63_v45  ;;  %v138_v49 = vadd.f32 1.0, %v203_v46  ;;  %v40_v45 = vld [vmem:[%s319_s2] sm:$0x3] }
  0xa6   :  { %216 = vlog2.f32 %v140_v47  ;;  %v66_v50 = vadd.f32 1.0, %v205_v48  ;;  %v207_v51 = vpop.eup %206 }
  0xa7   :  { %218 = vlog2.f32 %v138_v49  ;;  %v209_v52 = vpop.eup %208  ;;  %v64_v53 = vadd.f32 1.0, %v207_v51 }
  0xa8   :  { %220 = vlog2.f32 %v66_v50  ;;  %v141_v54 = vadd.f32 1.0, %v209_v52  ;;  %v211_v55 = vpop.eup %210  ;;  %v113_v50 = vsub.f32 1.0, %v40_v45  ;;  %v41_v52 = vld [vmem:[%s320_s3] sm:$0x3] }
  0xa9   :  { %222 = vlog2.f32 %v64_v53  ;;  %v139_v56 = vadd.f32 1.0, %v211_v55 }
  0xaa   :  { %224 = vlog2.f32 %v141_v54 }
  0xab   :  { %226 = vlog2.f32 %v139_v56  ;;  %v42_v56 = vsub.f32 0.0, %v41_v52 }
  0xb1   :  { %v213_v58 = vpop.eup %212 }
  0xb2   :  { %v215_v60 = vpop.eup %214  ;;  %v72_v61 = vmul.f32 0.6931472, %v213_v58 }
  0xb3   :  { %v217_v62 = vpop.eup %216  ;;  %v68_v0 = vmul.f32 0.6931472, %v215_v60 }
  0xb4   :  { %v219_v2 = vpop.eup %218  ;;  %v147_v3 = vmul.f32 0.6931472, %v217_v62  ;;  %v77_v7 = vsub.f32 %v45_v63, %v72_v61 }
  0xb5   :  { %v221_v5 = vpop.eup %220  ;;  %v75_v11 = vsub.f32 %v43_v4, %v68_v0  ;;  %v143_v13 = vmul.f32 0.6931472, %v219_v2 }
  0xb6   :  { %v74_v16 = vmul.f32 0.6931472, %v221_v5  ;;  %v223_v17 = vpop.eup %222  ;;  %v152_v23 = vsub.f32 %v120_v8, %v147_v3  ;;  %v81_v29 = vmax.f32 %v77_v7, -100.0 }
  0xb7   :  { %v225_v22 = vpop.eup %224  ;;  %v70_v27 = vmul.f32 0.6931472, %v223_v17  ;;  %v79_v30 = vmax.f32 %v75_v11, -100.0  ;;  %v150_v31 = vsub.f32 %v118_v18, %v143_v13 }
  0xb8   :  { %v78_v24 = vsub.f32 %v46_v15, %v74_v16  ;;  %v149_v12 = vmul.f32 0.6931472, %v225_v22  ;;  %v227_v35 = vpop.eup %226  ;;  %v156_v36 = vmax.f32 %v152_v23, -100.0  ;;  %v103_v40 = vrot.slane %v81_v29, %v91_v28 }
  0xb9   :  { %v76_v33 = vsub.f32 %v44_v25, %v70_v27  ;;  %v145_v39 = vmul.f32 0.6931472, %v227_v35  ;;  %v92_v42 = vrot.slane %v79_v30, %v91_v28  ;;  %v154_v19 = vmax.f32 %v150_v31, -100.0 }
  0xba   :  { %v82_v32 = vmax.f32 %v78_v24, -100.0  ;;  %v153_v10 = vsub.f32 %v121_v9, %v149_v12  ;;  %v174_v46 = vrot.slane %v156_v36, %v91_v28 }
  0xbb   :  { %v80_v38 = vmax.f32 %v76_v33, -100.0  ;;  %v151_v43 = vsub.f32 %v119_v14, %v145_v39  ;;  %v165_v48 = vrot.slane %v154_v19, %v91_v28 }
  0xbc   :  { %v107_v37 = vrot.slane %v82_v32, %v96_v21  ;;  %v157_v41 = vmax.f32 %v153_v10, -100.0 }
  0xbd   :  { %v97_v26 = vrot.slane %v80_v38, %v96_v21  ;;  %v155_v20 = vmax.f32 %v151_v43, -100.0 }
  0xbe   :  { %v178_v44 = vrot.slane %v157_v41, %v96_v21  ;;  %v108_v47 = vsel %vm98_vm0, %v107_v37, %v103_v40 }
  0xbf   :  { %v99_v34 = vsel %vm98_vm0, %v97_v26, %v92_v42  ;;  %v169_v49 = vrot.slane %v155_v20, %v96_v21 }
  0xc0   :  { %v179_v51 = vsel %vm98_vm0, %v178_v44, %v174_v46  ;;  %v110_v53 = vsel %vm109_vm1, %v108_v47, %v99_v34 }
  0xc1   :  { %v170_v54 = vsel %vm98_vm0, %v169_v49, %v165_v48  ;;  %v112_v57 = vmul.f32 %v110_v53, %v40_v45 }
  0xc2   :  { %v180_v55 = vsel %vm109_vm1, %v179_v51, %v170_v54 }
  0xc3   :  { %v182_v58 = vmul.f32 %v180_v55, %v113_v50 }
  0xc5   :  { %v183_v59 = vadd.f32 %v182_v58, %v112_v57 }
  0xc7   :  { %v184_v60 = vmul.f32 %v183_v59, %v42_v56 }
  0xc9   :  { %v186_v61 = vsel %vm185_vm2, %v184_v60, 0.0 }
  0xca   :  { %187 = vadd.xlane.f32.xlu0 %v186_v61 }
 0x153   :  { %v188_v62 = vpop.xlane.xlu0 %187 }
 0x154   :  { %190 = vst.msk [vmem:[%s321_s4] sm:$0x3] %vm189_vm3, %v188_v62 }

</bundles_post_ra>
